<compile_context>
chip_gen: v6e
topology: v6e:2x2x1
jax: 0.10.0
libtpu: 0.0.40
codegen_flags: <defaults>
</compile_context>

<pallas_src>
import functools

import jax
import jax.numpy as jnp
from jax import lax
from jax.experimental import pallas as pl
from jax.experimental.pallas import tpu as pltpu

NOISE_STD = 0.05
NOISE_PROB = 0.7
MASK_PROB = 1.0
MASK_PATCHES = 3
MIN_MASK_LEN, MAX_MASK_LEN = 10, 30

# params layout (int32[2 + 2*MASK_PATCHES], SMEM scalar prefetch):
#   [0]            apply_noise gate (0/1)
#   [1]            apply_mask  gate (0/1)
#   [2+2i], [3+2i] (start, length) of mask patch i


def _eeg_aug_kernel(params_ref, x_ref, noise_ref, o_ref):
    x = x_ref[...]
    t = x.shape[1]

    # ---- additive Gaussian noise (gate folded into a scalar scale) ----
    # The noise block is DMA'd by the BlockSpec either way; the FMA below is
    # free under the memory roofline, so no pl.when branch is needed.
    noise_scale = jnp.where(params_ref[0] > 0, NOISE_STD, 0.0).astype(x.dtype)
    x = x + noise_ref[...] * noise_scale

    # ---- zero-mask random time patches: (1, t) lane mask, broadcast on store ----
    idx = lax.broadcasted_iota(jnp.int32, (1, t), 1)
    drop = jnp.zeros((1, t), dtype=jnp.bool_)
    for i in range(MASK_PATCHES):  # static unroll (mask_patches = 3)
        start = params_ref[2 + 2 * i]
        length = params_ref[3 + 2 * i]
        drop = drop | ((idx >= start) & (idx < start + length))
    drop = jnp.logical_and(drop, params_ref[1] > 0)
    keep = jnp.where(drop, 0.0, 1.0).astype(x.dtype)  # (1, t)

    o_ref[...] = (x * keep).astype(o_ref.dtype)


def make_params(key, t):
    """Device-side scalar randomness mirroring the torch .item() control flow
    (drawn once per forward, shared across batch & channels)."""
    keys = jax.random.split(key, 2 + 2 * MASK_PATCHES)
    apply_noise = (jax.random.uniform(keys[0], ()) < NOISE_PROB).astype(jnp.int32)
    apply_mask = (jax.random.uniform(keys[1], ()) < MASK_PROB).astype(jnp.int32)
    parts = [apply_noise, apply_mask]
    for i in range(MASK_PATCHES):
        raw_len = jax.random.randint(keys[2 + 2 * i], (), MIN_MASK_LEN, MAX_MASK_LEN + 1)
        mask_len = jnp.minimum(raw_len, t)
        can_mask = t > mask_len
        start = jax.random.randint(
            keys[3 + 2 * i], (), 0, jnp.maximum(t - mask_len + 1, 1))
        start = jnp.where(can_mask, start, 0)
        mask_len = jnp.where(can_mask, mask_len, 0)  # PyTorch skips masking here
        parts += [start.astype(jnp.int32), mask_len.astype(jnp.int32)]
    return jnp.stack(parts).astype(jnp.int32)


def _pick_tile_rows(rows):
    # Biggest row tile that keeps the live VMEM footprint small (~a few MiB at
    # typical EEG t) and satisfies the (8, 128) block constraint.
    if rows <= 512:
        return rows          # full dim -> always a legal block shape
    return 512               # multiple of 8; ragged last tile handled by Pallas


def apply_eeg_aug(x, noise, params):
    """x: (batch, channels, time); noise: same shape; params: int32[2+2*MASK_PATCHES]."""
    b, c, t = x.shape
    rows = b * c
    x2 = x.reshape(rows, t)
    n2 = noise.reshape(rows, t).astype(x.dtype)

    tile_r = _pick_tile_rows(rows)
    grid = (pl.cdiv(rows, tile_r),)
    blk = lambda i, p: (i, 0)

    out = pl.pallas_call(
        _eeg_aug_kernel,
        out_shape=jax.ShapeDtypeStruct((rows, t), x.dtype),
        grid_spec=pltpu.PrefetchScalarGridSpec(
            num_scalar_prefetch=1,
            grid=grid,
            in_specs=[
                pl.BlockSpec((tile_r, t), blk),   # x
                pl.BlockSpec((tile_r, t), blk),   # noise
            ],
            out_specs=pl.BlockSpec((tile_r, t), blk),
        ),
        compiler_params=pltpu.CompilerParams(
            dimension_semantics=("parallel",),
        ),
    )(params, x2, n2)
    return out.reshape(b, c, t)


@functools.partial(jax.jit, static_argnums=())
def eeg_aug(x, key):
    b, c, t = x.shape
    k_noise, k_params = jax.random.split(key)
    params = make_params(k_params, t)
    noise = jax.random.normal(k_noise, (b * c, t), dtype=x.dtype).reshape(b, c, t)
    return apply_eeg_aug(x, noise, params)


def _reference(x, noise, params):
    """Pure-JAX reference of the same semantics, for a sanity check."""
    b, c, t = x.shape
    gate_noise = (params[0] > 0).astype(x.dtype)
    y = x + noise.astype(x.dtype) * (NOISE_STD * gate_noise)
    idx = jnp.arange(t)
    drop = jnp.zeros((t,), dtype=bool)
    for i in range(MASK_PATCHES):
        s, l = params[2 + 2 * i], params[3 + 2 * i]
        drop = drop | ((idx >= s) & (idx < s + l))
    drop = drop & (params[1] > 0)
    return jnp.where(drop[None, None, :], jnp.zeros([], x.dtype), y)


if __name__ == "__main__":
    key = jax.random.PRNGKey(0)
    k_x, k_aug = jax.random.split(key)

    batch, channels, t = 2, 4, 256  # small EEG-like shape; t lane-aligned
    x = jax.random.normal(k_x, (batch, channels, t), dtype=jnp.float32)

    # End-to-end path (device-side params + noise + Pallas kernel).
    y = eeg_aug(x, k_aug)
    jax.block_until_ready(y)
    assert y.shape == x.shape and y.dtype == x.dtype

    # Correctness sanity check against the pure-JAX reference using the same
    # params / noise.
    k_noise, k_params = jax.random.split(k_aug)
    params = make_params(k_params, t)
    noise = jax.random.normal(
        k_noise, (batch * channels, t), dtype=x.dtype).reshape(batch, channels, t)
    y_kernel = apply_eeg_aug(x, noise, params)
    y_ref = _reference(x, noise, params)
    assert jnp.allclose(y_kernel, y_ref, atol=1e-6, rtol=1e-6)

    print("KERNEL_OK")
</pallas_src>

<mosaic_0001>
module attributes {stable_mosaic.version = 11 : i64} {
  func.func @_eeg_aug_kernel(%arg0: i32, %arg1: memref<8xi32, #tpu.memory_space<smem>>, %arg2: memref<8x256xf32, #tpu.memory_space<vmem>>, %arg3: memref<8x256xf32, #tpu.memory_space<vmem>>, %arg4: memref<8x256xf32, #tpu.memory_space<vmem>>) attributes {dimension_semantics = [#tpu.dimension_semantics<parallel>], iteration_bounds = array<i64: 1>, scalar_prefetch = 1 : i64, scratch_operands = 0 : i64, tpu.core_type = #tpu.core_type<tc>, window_params = [{transform_indices = @transform_0, window_bounds = array<i64: 8, 256>}, {transform_indices = @transform_1, window_bounds = array<i64: 8, 256>}, {transform_indices = @transform_2, window_bounds = array<i64: 8, 256>}]} {
    %c0 = arith.constant 0 : index
    %c0_0 = arith.constant 0 : index
    %0 = vector.load %arg2[%c0, %c0_0] : memref<8x256xf32, #tpu.memory_space<vmem>>, vector<8x256xf32>
    %c0_1 = arith.constant 0 : index
    %1 = memref.load %arg1[%c0_1] : memref<8xi32, #tpu.memory_space<smem>>
    %c0_i32 = arith.constant 0 : i32
    %2 = arith.cmpi sgt, %1, %c0_i32 : i32
    %cst = arith.constant 5.000000e-02 : f32
    %cst_2 = arith.constant 0.000000e+00 : f32
    %3 = arith.select %2, %cst, %cst_2 : f32
    %c0_3 = arith.constant 0 : index
    %c0_4 = arith.constant 0 : index
    %4 = vector.load %arg3[%c0_3, %c0_4] : memref<8x256xf32, #tpu.memory_space<vmem>>, vector<8x256xf32>
    %5 = vector.broadcast %3 : f32 to vector<8x256xf32>
    %6 = arith.mulf %4, %5 : vector<8x256xf32>
    %7 = arith.addf %0, %6 : vector<8x256xf32>
    %8 = tpu.iota {dimensions = array<i32: 1>} : vector<1x256xi32>
    %false = arith.constant false
    %9 = vector.broadcast %false : i1 to vector<1x256xi1>
    %c2 = arith.constant 2 : index
    %10 = memref.load %arg1[%c2] : memref<8xi32, #tpu.memory_space<smem>>
    %c3 = arith.constant 3 : index
    %11 = memref.load %arg1[%c3] : memref<8xi32, #tpu.memory_space<smem>>
    %12 = vector.broadcast %10 : i32 to vector<1x256xi32>
    %13 = arith.cmpi sge, %8, %12 : vector<1x256xi32>
    %14 = arith.addi %10, %11 : i32
    %15 = vector.broadcast %14 : i32 to vector<1x256xi32>
    %16 = arith.cmpi slt, %8, %15 : vector<1x256xi32>
    %17 = arith.andi %13, %16 : vector<1x256xi1>
    %18 = arith.ori %9, %17 : vector<1x256xi1>
    %c4 = arith.constant 4 : index
    %19 = memref.load %arg1[%c4] : memref<8xi32, #tpu.memory_space<smem>>
    %c5 = arith.constant 5 : index
    %20 = memref.load %arg1[%c5] : memref<8xi32, #tpu.memory_space<smem>>
    %21 = vector.broadcast %19 : i32 to vector<1x256xi32>
    %22 = arith.cmpi sge, %8, %21 : vector<1x256xi32>
    %23 = arith.addi %19, %20 : i32
    %24 = vector.broadcast %23 : i32 to vector<1x256xi32>
    %25 = arith.cmpi slt, %8, %24 : vector<1x256xi32>
    %26 = arith.andi %22, %25 : vector<1x256xi1>
    %27 = arith.ori %18, %26 : vector<1x256xi1>
    %c6 = arith.constant 6 : index
    %28 = memref.load %arg1[%c6] : memref<8xi32, #tpu.memory_space<smem>>
    %c7 = arith.constant 7 : index
    %29 = memref.load %arg1[%c7] : memref<8xi32, #tpu.memory_space<smem>>
    %30 = vector.broadcast %28 : i32 to vector<1x256xi32>
    %31 = arith.cmpi sge, %8, %30 : vector<1x256xi32>
    %32 = arith.addi %28, %29 : i32
    %33 = vector.broadcast %32 : i32 to vector<1x256xi32>
    %34 = arith.cmpi slt, %8, %33 : vector<1x256xi32>
    %35 = arith.andi %31, %34 : vector<1x256xi1>
    %36 = arith.ori %27, %35 : vector<1x256xi1>
    %c1 = arith.constant 1 : index
    %37 = memref.load %arg1[%c1] : memref<8xi32, #tpu.memory_space<smem>>
    %c0_i32_5 = arith.constant 0 : i32
    %38 = arith.cmpi sgt, %37, %c0_i32_5 : i32
    %39 = vector.broadcast %38 : i1 to vector<1x256xi1>
    %40 = arith.andi %36, %39 : vector<1x256xi1>
    %cst_6 = arith.constant 0.000000e+00 : f32
    %cst_7 = arith.constant 1.000000e+00 : f32
    %41 = vector.broadcast %cst_6 : f32 to vector<1x256xf32>
    %42 = vector.broadcast %cst_7 : f32 to vector<1x256xf32>
    %43 = arith.select %40, %41, %42 : vector<1x256xi1>, vector<1x256xf32>
    %44 = vector.broadcast %43 : vector<1x256xf32> to vector<8x256xf32>
    %45 = arith.mulf %7, %44 : vector<8x256xf32>
    %c0_8 = arith.constant 0 : index
    %c0_9 = arith.constant 0 : index
    %46 = vector.load %arg4[%c0_8, %c0_9] : memref<8x256xf32, #tpu.memory_space<vmem>>, vector<8x256xf32>
    tpu.vector_store %arg4[%c0_8, %c0_9], %45 {strides = array<i32>} : memref<8x256xf32, #tpu.memory_space<vmem>>, vector<8x256xf32>,
    return
  }
  func.func @transform_0(%arg0: i32, %arg1: memref<8xi32, #tpu.memory_space<smem>>) -> (i32, i32) {
    %c0_i32 = arith.constant 0 : i32
    %c0_i32_0 = arith.constant 0 : i32
    return %arg0, %c0_i32 : i32, i32
  }
  func.func @transform_1(%arg0: i32, %arg1: memref<8xi32, #tpu.memory_space<smem>>) -> (i32, i32) {
    %c0_i32 = arith.constant 0 : i32
    %c0_i32_0 = arith.constant 0 : i32
    return %arg0, %c0_i32 : i32, i32
  }
  func.func @transform_2(%arg0: i32, %arg1: memref<8xi32, #tpu.memory_space<smem>>) -> (i32, i32) {
    %c0_i32 = arith.constant 0 : i32
    %c0_i32_0 = arith.constant 0 : i32
    return %arg0, %c0_i32 : i32, i32
  }
}

</mosaic_0001>

<bundles_post_ra>
// kernel: eeg_aug.1
= control target key start
LH: loop header
LB: loop body
LE: loop exit
PB: predicated region body
PF: predicated region fallthrough
CT: control target
= control target key end

     0   :  { %s182_s0 = inlined_call_operand.vmem [shape: s32[8], index: 0, kind: input, shape index: {}]   ;;  %s183_s1 = inlined_call_operand.vmem [shape: f32[8,256], index: 1, kind: input, shape index: {}]   ;;  %s184_s2 = inlined_call_operand.vmem [shape: f32[8,256], index: 2, kind: input, shape index: {}]   ;;  %s185_s3 = inlined_call_operand.vmem [shape: f32[8,256], index: 3, kind: output, shape index: {}]  }
   0x1   :  { %s8_s14 = sshll.u32 %s182_s0, 4  ;;  %s9_s14 = int_to_ptr.vmem [resolvable:$true] %s8_s14 }
   0x2   :  { %s96_s15 = scalar_lea.vmem %s9_s14, 16  ;;  %p101_p1 = scmp.lt.s32.totalorder %s9_s14, %s9_s14 }
   0x3   :  { %p97_p0 = scmp.ne.s32.totalorder %s9_s14, %s96_s15  ;;  %p102_p2 = scmp.lt.s32.totalorder %s96_s15, %s96_s15 }
   0x5   :  { %p103_p3 = por %p102_p2, %p101_p1 }
   0x7   :  { %p104_p4 = pnand %p103_p3, %p97_p0 }
   0x9   :  { %107 = shalt.err (!%p104_p4)  }
   0xa   :  { %s110_s16 = smov [#allocation3]  }
   0xb   :  { %11 = dma.vmem_to_smem %s9_s14, 16, %s110_s16, [#allocation2] }
   0xc   :  { %108 = dma.done.wait [#allocation2], 16 }
   0xd   :  { %109 = vsyncadd [#allocation2], 4294967280 }
   0xe   :  { %13 = sfence }
   0xf   :  { %s20_s17 = sld [smem:[#allocation3]]  ;;  %v30_v0 = vlaneseq  ;;  %v23_v4 = vld [vmem:[%s184_s2] sm:$0xff]  ;;  %v24_v14 = vld [vmem:[%s184_s2 + $0x8] sm:$0xff]  ;;  %v111_v20 = vmov 1.0  }
  0x10   :  { %s135_s18 = sld [smem:[#allocation3 + $0x2]]  ;;  %v18_v13 = vld [vmem:[%s183_s1] sm:$0xff]  ;;  %v19_v19 = vld [vmem:[%s183_s1 + $0x8] sm:$0xff] }
  0x11   :  { %s88_s0 = sld [smem:[#allocation3 + $0x3]]  ;;  %v31_v1 = vand.u32 127, %v30_v0 }
  0x12   :  { %s137_s19 = sld [smem:[#allocation3 + $0x4]] }
  0x13   :  { %s90_s20 = sld [smem:[#allocation3 + $0x5]]  ;;  %v32_v7 = vadd.s32 128, %v31_v1 }
  0x14   :  { %s139_s21 = sld [smem:[#allocation3 + $0x6]] }
  0x15   :  { %p21_p5 = scmp.gt.s32.totalorder %s20_s17, 0  ;;  %s92_s22 = sld [smem:[#allocation3 + $0x7]] }
  0x16   :  { %v35_v2 = vstv %s135_s18  ;;  %s93_s23 = sld [smem:[#allocation3 + $0x1]] }
  0x17   :  { %s142_s24 = scalar_select %p21_p5, 0.05, 0.0  ;;  %vm36_vm0 = vcmp.ge.s32.totalorder %v31_v1, %v35_v2  ;;  %vm37_vm9 = vcmp.ge.s32.totalorder %v32_v7, %v35_v2 }
  0x18   :  { %s38_s25 = sadd.s32 %s88_s0, %s135_s18  ;;  %v46_v3 = vstv %s137_s19 }
  0x19   :  { %v25_v5 = vstv %s142_s24  ;;  %v39_v6 = vstv %s38_s25  ;;  %vm47_vm1 = vcmp.ge.s32.totalorder %v31_v1, %v46_v3  ;;  %s49_s28 = sadd.s32 %s90_s20, %s137_s19  ;;  %vm48_vm12 = vcmp.ge.s32.totalorder %v32_v7, %v46_v3 }
  0x1a   :  { %vm40_vm2 = vcmp.lt.s32.totalorder %v31_v1, %v39_v6  ;;  %v50_v8 = vstv %s49_s28  ;;  %v59_v9 = vstv %s139_s21  ;;  %v26_v11 = vmul.f32 %v25_v5, %v23_v4 }
  0x1b   :  { %vm152_vm3 = vmand %vm36_vm0, %vm40_vm2  ;;  %vm51_vm4 = vcmp.lt.s32.totalorder %v31_v1, %v50_v8  ;;  %vm60_vm5 = vcmp.ge.s32.totalorder %v31_v1, %v59_v9  ;;  %s62_s29 = sadd.s32 %s92_s22, %s139_s21  ;;  %vm41_vm10 = vcmp.lt.s32.totalorder %v32_v7, %v39_v6  ;;  %vm52_vm13 = vcmp.lt.s32.totalorder %v32_v7, %v50_v8 }
  0x1c   :  { %vm53_vm6 = vmand %vm47_vm1, %vm51_vm4  ;;  %v63_v12 = vstv %s62_s29  ;;  %p71_p6 = scmp.gt.s32.totalorder %s93_s23, 0  ;;  %v28_v15 = vadd.f32 %v26_v11, %v18_v13  ;;  %v27_v17 = vmul.f32 %v25_v5, %v24_v14  ;;  %vm61_vm2 = vcmp.ge.s32.totalorder %v32_v7, %v59_v9 }
  0x1d   :  { %vm55_vm7 = vmor %vm152_vm3, %vm53_vm6  ;;  %vm64_vm8 = vcmp.lt.s32.totalorder %v31_v1, %v63_v12  ;;  %vm65_vm3 = vcmp.lt.s32.totalorder %v32_v7, %v63_v12 }
  0x1e   :  { %vm66_vm11 = vmand %vm60_vm5, %vm64_vm8  ;;  %s72_s7 = scalar_select %p71_p6, 1, 0  ;;  %v29_v23 = vadd.f32 %v27_v17, %v19_v19 }
  0x1f   :  { %vm68_vm14 = vmor %vm55_vm7, %vm66_vm11 }
  0x20   :  { %v73_v16 = vstv %s72_s7  ;;  %vm43_vm15 = vmand %vm37_vm9, %vm41_vm10 }
  0x21   :  { %vm165_vm0 = vcmp.eq.s32.totalorder %v73_v16, 1  ;;  %vm54_vm1 = vmand %vm48_vm12, %vm52_vm13 }
  0x22   :  { %vm75_vm4 = vmand %vm68_vm14, %vm165_vm0 }
  0x23   :  { %v77_v21 = vsel %vm75_vm4, 0.0, %v111_v20  ;;  %vm56_vm5 = vmor %vm43_vm15, %vm54_vm1 }
  0x24   :  { %v79_v22 = vmul.f32 %v77_v21, %v28_v15  ;;  %vm67_vm6 = vmand %vm61_vm2, %vm65_vm3 }
  0x25   :  { %vm69_vm7 = vmor %vm56_vm5, %vm67_vm6 }
  0x26   :  { %81 = vst [vmem:[%s185_s3] sm:$0xff] %v79_v22  ;;  %vm76_vm8 = vmand %vm69_vm7, %vm165_vm0 }
  0x27   :  { %v78_v24 = vsel %vm76_vm8, 0.0, %v111_v20 }
  0x28   :  { %v80_v25 = vmul.f32 %v78_v24, %v29_v23 }
  0x2a   :  { %82 = vst [vmem:[%s185_s3 + $0x8] sm:$0xff] %v80_v25 }

</bundles_post_ra>
